<compile_context>
chip_gen: v7x
topology: tpu7x:2x2x1
jax: 0.10.0
libtpu: 0.0.40
codegen_flags: <defaults>
</compile_context>

<pallas_src>
import math
from typing import List, NamedTuple, Optional, Tuple

import jax
import jax.numpy as jnp
from jax.experimental import pallas as pl
from jax.experimental.pallas import tpu as pltpu


# ----------------------------------------------------------------------------
# Bilinear interpolation matrices (align_corners=False, given scale_factor)
# ----------------------------------------------------------------------------
def _interp_matrix(in_size: int, out_size: int, scale_factor: float) -> jnp.ndarray:
    """W of shape (out_size, in_size) with  out = W @ in  (1-D bilinear, f32)."""
    dst = jnp.arange(out_size, dtype=jnp.float32)
    # PyTorch: src = (dst + 0.5) / scale_factor - 0.5, clamped at 0
    src = (dst + 0.5) / jnp.float32(scale_factor) - 0.5
    src = jnp.maximum(src, 0.0)
    i0 = jnp.minimum(jnp.floor(src).astype(jnp.int32), in_size - 1)
    i1 = jnp.minimum(i0 + 1, in_size - 1)
    w1 = jnp.clip(src - i0.astype(jnp.float32), 0.0, 1.0)
    w0 = 1.0 - w1
    idx = jnp.arange(in_size, dtype=jnp.int32)
    onehot0 = (idx[None, :] == i0[:, None]).astype(jnp.float32)
    onehot1 = (idx[None, :] == i1[:, None]).astype(jnp.float32)
    return w0[:, None] * onehot0 + w1[:, None] * onehot1


def _interp_matrix_rows_padded(in_size, out_size, pad_size, scale) -> jnp.ndarray:
    """(pad_size, in_size) bf16; rows >= out_size are zero."""
    w = _interp_matrix(in_size, out_size, scale)
    return jnp.pad(w, ((0, pad_size - out_size), (0, 0))).astype(jnp.bfloat16)


def _interp_matrix_cols_padded(in_size, out_size, pad_size, scale) -> jnp.ndarray:
    """(in_size, pad_size) bf16; cols >= out_size are zero (this is Ww^T padded)."""
    w = _interp_matrix(in_size, out_size, scale).T
    return jnp.pad(w, ((0, 0), (0, pad_size - out_size))).astype(jnp.bfloat16)


# ----------------------------------------------------------------------------
# Per-image execution plan (contraction order, tile size, VMEM sizing)
# ----------------------------------------------------------------------------
class _Plan(NamedTuple):
    height_first: bool    # True: (Wh_tile @ x) @ WwT ; False: Wh @ (x @ WwT_tile)
    tile: int             # output-row tile (height_first) or output-col tile
    n_tiles: int
    block_bytes: int      # single-buffer per-step VMEM estimate
    macs: int             # per-channel MAC count for this order


def _vmem_budget_bytes() -> int:
    """Generation-aware VMEM budget (<= ~3/4 of physical per-TensorCore VMEM)."""
    try:
        cap = int(pltpu.get_tpu_info().vmem_capacity_bytes)
    except Exception:
        cap = 64 << 20  # conservative default: v7x has 64 MiB per TensorCore
    return max(24 << 20, (3 * cap) // 4)


def _largest_tile(dim: int, unit: int, cap: int) -> int:
    """Largest divisor of `dim` that is a multiple of `unit` and <= cap.
    Falls back to the full `dim` (always a legal block: full array extent)."""
    best, found = dim, False
    t = unit
    top = min(dim, cap)
    while t <= top:
        if dim % t == 0:
            best, found = t, True
        t += unit
    return best if found else dim


def _plan_vmem_bytes(height_first, tile, h_in, w_in, h_pad, w_pad) -> int:
    if height_first:
        return (h_in * w_in * 2          # image channel (bf16, resident over tiles)
                + tile * h_in * 2        # Wh row tile (bf16)
                + w_in * w_pad * 2       # Ww^T (bf16, resident)
                + tile * w_in * 6        # f32 intermediate + bf16 recast
                + tile * w_pad * 8)      # f32 result + f32 output tile
    return (h_in * w_in * 2
            + h_pad * h_in * 2           # Wh (bf16, resident)
            + w_in * tile * 2            # Ww^T column tile (bf16)
            + h_in * tile * 6
            + h_pad * tile * 8)


def _make_plan(h_in, w_in, h_pad, w_pad, vmem_budget) -> _Plan:
    def build(height_first):
        # height_first tiles the sublane axis (unit 32); width_first tiles the lane
        # axis, where blocks must be multiples of 128 (or the full width).
        dim, unit = (h_pad, 32) if height_first else (w_pad, 128)
        tile = dim
        for cap in (512, 256, 128, 64, 32):
            tile = _largest_tile(dim, unit, cap)
            if (2 * _plan_vmem_bytes(height_first, tile, h_in, w_in, h_pad, w_pad)
                    + (8 << 20)) <= vmem_budget:
                break
        bb = _plan_vmem_bytes(height_first, tile, h_in, w_in, h_pad, w_pad)
        macs = (h_pad * w_in * (h_in + w_pad) if height_first
                else h_in * w_pad * (w_in + h_pad))
        return _Plan(height_first, tile, dim // tile, bb, macs)

    hf, wf = build(True), build(False)
    best, other = (hf, wf) if hf.macs <= wf.macs else (wf, hf)
    # If the MAC-optimal order blows the VMEM budget but the other order fits, switch.
    if (2 * best.block_bytes + (8 << 20) > vmem_budget
            and 2 * other.block_bytes + (8 << 20) <= vmem_budget):
        best = other
    return best


# ----------------------------------------------------------------------------
# Pallas kernel: fused bilinear resize (2 bf16 MXU matmuls) + zero-pad, writing
# directly into one batch slice of the shared NCHW canvas.
# ----------------------------------------------------------------------------
def _resize_pad_write(canvas, img, wl, wr, *, batch_index, n_imgs, h_pad, w_pad,
                      plan, vmem_budget):
    n_ch, h_in, w_in = img.shape
    tile, height_first, n_tiles = plan.tile, plan.height_first, plan.n_tiles

    def body(img_ref, wl_ref, wr_ref, out_ref):
        x = img_ref[0]                                              # bf16 (h_in, w_in), pre-normalized
        if height_first:
            t = jnp.dot(wl_ref[...], x, preferred_element_type=jnp.float32)
            y = jnp.dot(t.astype(jnp.bfloat16), wr_ref[...],
                        preferred_element_type=jnp.float32)          # (tile, w_pad)
        else:
            t = jnp.dot(x, wr_ref[...], preferred_element_type=jnp.float32)
            y = jnp.dot(wl_ref[...], t.astype(jnp.bfloat16),
                        preferred_element_type=jnp.float32)          # (h_pad, tile)
        # Single full-block, lane-dense store; interp matrices are pre-padded with
        # zero rows/cols so the pad region is exactly 0 without any masking.
        out_ref[...] = y[None, None].astype(out_ref.dtype)

    img_spec = pl.BlockSpec((1, h_in, w_in), lambda ci, r: (ci, 0, 0))   # resident over r
    if height_first:
        wl_spec = pl.BlockSpec((tile, h_in), lambda ci, r: (r, 0))       # Wh row tile
        wr_spec = pl.BlockSpec((w_in, w_pad), lambda ci, r: (0, 0))      # Ww^T resident
        out_spec = pl.BlockSpec((1, 1, tile, w_pad),
                                lambda ci, r: (batch_index, ci, r, 0))
    else:
        wl_spec = pl.BlockSpec((h_pad, h_in), lambda ci, r: (0, 0))      # Wh resident
        wr_spec = pl.BlockSpec((w_in, tile), lambda ci, r: (0, r))       # Ww^T col tile
        out_spec = pl.BlockSpec((1, 1, h_pad, tile),
                                lambda ci, r: (batch_index, ci, 0, r))

    in_specs = [img_spec, wl_spec, wr_spec]
    operands = [img, wl, wr]
    io_aliases = {}
    if canvas is None:
        # First image: allocate the whole batched canvas here (no zero-fill, no alias);
        # every batch slice is fully written by exactly one call in the chain.
        kernel = body
    else:
        in_specs.append(pl.BlockSpec(memory_space=pl.ANY))               # aliased, not DMA'd
        operands.append(canvas)
        io_aliases = {3: 0}                                              # canvas -> output (in place)

        def kernel(img_ref, wl_ref, wr_ref, canvas_hbm_ref, out_ref):
            del canvas_hbm_ref  # written only through out_ref
            body(img_ref, wl_ref, wr_ref, out_ref)

    flops = 2 * n_ch * plan.macs
    bytes_accessed = (n_ch * h_in * w_in * 2 + wl.size * 2 + wr.size * 2
                      + n_ch * h_pad * w_pad * 4)
    vmem_limit = int(min(vmem_budget, max(32 << 20, 2 * plan.block_bytes + (8 << 20))))
    # Put "parallel" on the many-tile axis for an even v7x megacore split.
    dims = ("arbitrary", "parallel") if n_tiles > 1 else ("parallel", "arbitrary")

    return pl.pallas_call(
        kernel,
        out_shape=jax.ShapeDtypeStruct((n_imgs, n_ch, h_pad, w_pad), jnp.float32),
        grid=(n_ch, n_tiles),
        in_specs=in_specs,
        out_specs=out_spec,
        input_output_aliases=io_aliases,
        compiler_params=pltpu.CompilerParams(
            dimension_semantics=dims, vmem_limit_bytes=vmem_limit),
        cost_estimate=pl.CostEstimate(flops=flops, transcendentals=0,
                                      bytes_accessed=bytes_accessed),
    )(*operands)


# ----------------------------------------------------------------------------
# Batched canvas builder (jitted per static geometry)
# ----------------------------------------------------------------------------
def _build_batched_canvas(images, norm_c, infos, h_pad, w_pad, vmem_budget):
    n_imgs = len(images)
    canvas = None
    for idx, (img, info) in enumerate(zip(images, infos)):
        h, w, h_out, w_out, ratio = info
        # Normalize BEFORE the resize, fused with the bf16 cast the kernel needs anyway.
        # Valid because each bilinear weight row sums to 1 (so the constant commutes
        # through the resize) and the padded rows/cols of Wh/Ww^T are all zero (so the
        # pad stays exactly 0).
        img_n = (img.astype(jnp.float32) - norm_c[:, None, None]).astype(jnp.bfloat16)
        wl = _interp_matrix_rows_padded(h, h_out, h_pad, ratio)    # (h_pad, h)  bf16
        wr = _interp_matrix_cols_padded(w, w_out, w_pad, ratio)    # (w, w_pad)  bf16
        plan = _make_plan(h, w, h_pad, w_pad, vmem_budget)
        canvas = _resize_pad_write(canvas, img_n, wl, wr,
                                   batch_index=idx, n_imgs=n_imgs,
                                   h_pad=h_pad, w_pad=w_pad,
                                   plan=plan, vmem_budget=vmem_budget)
    return canvas


_build_batched_canvas_jit = jax.jit(_build_batched_canvas, static_argnums=(2, 3, 4, 5))


# ----------------------------------------------------------------------------
# Module-level wrapper (eval-mode forward of GeneralizedRCNNTransform)
# ----------------------------------------------------------------------------
class ImageList:
    def __init__(self, tensors, image_sizes):
        self.tensors = tensors
        self.image_sizes = image_sizes


class GeneralizedRCNNTransformPallas:
    def __init__(self, min_size, max_size, image_mean, image_std, size_divisible=32):
        if not isinstance(min_size, (tuple, list)):
            min_size = (min_size,)
        self.min_size = tuple(min_size)
        self.max_size = max_size
        self.image_mean = jnp.asarray(image_mean, jnp.float32)
        self.image_std = jnp.asarray(image_std, jnp.float32)
        # Reference normalize() is  x - mean - std  (kept exactly as written).
        self._norm_c = self.image_mean + self.image_std
        # Kept at 32 to match the module; rounding w_pad to 128 would make every
        # output row store fully lane-dense if the downstream backbone tolerates it.
        self.size_divisible = size_divisible
        self._vmem_budget = _vmem_budget_bytes()

    def forward(self, images: List[jnp.ndarray], targets: Optional[List[dict]] = None):
        size = float(self.min_size[-1])  # eval-mode size choice

        # static per-image resize geometry
        infos = []
        for img in images:
            assert img.ndim == 3, "image must be (C, H, W)"
            _, h, w = img.shape
            img_min, img_max = float(min(h, w)), float(max(h, w))
            ratio = size / img_min
            if ratio * img_max > self.max_size:
                ratio = self.max_size / img_max
            infos.append((h, w, int(math.floor(h * ratio)), int(math.floor(w * ratio)),
                          ratio))

        stride = float(self.size_divisible)
        h_pad = int(math.ceil(max(i[2] for i in infos) / stride) * stride)
        w_pad = int(math.ceil(max(i[3] for i in infos) / stride) * stride)

        n_ch = images[0].shape[0]
        for img in images:
            assert img.shape[0] == n_ch, "all images must share the channel count"

        canvas = _build_batched_canvas_jit(tuple(images), self._norm_c, tuple(infos),
                                           h_pad, w_pad, self._vmem_budget)

        image_sizes: List[Tuple[int, int]] = []
        new_targets = [] if targets is not None else None
        for idx, (h, w, h_out, w_out, _) in enumerate(infos):
            image_sizes.append((h_out, w_out))  # (reference has a typo here; intent kept)
            if targets is not None:
                tgt = dict(targets[idx])
                rh = float(h_out) / float(h)
                rw = float(w_out) / float(w)
                # A (nb, 4) elementwise multiply is below Pallas-kernel granularity
                # (pure launch overhead + masked <128-lane stores); keep it in jnp.
                scale = jnp.asarray([rw, rh, rw, rh], jnp.float32)
                tgt["boxes"] = tgt["boxes"].astype(jnp.float32) * scale[None, :]
                new_targets.append(tgt)

        return ImageList(canvas, image_sizes), new_targets

    __call__ = forward


# ----------------------------------------------------------------------------
# Pure-jnp reference (for a tolerance check of the fused kernel)
# ----------------------------------------------------------------------------
def _reference_batched(images, mean, std, infos, h_pad, w_pad):
    outs = []
    for img, (h, w, h_out, w_out, ratio) in zip(images, infos):
        x = img.astype(jnp.float32) - mean[:, None, None] - std[:, None, None]
        wh = _interp_matrix(h, h_out, ratio)
        ww = _interp_matrix(w, w_out, ratio)
        y = jnp.einsum("oi,cij,pj->cop", wh, x, ww)
        y = jnp.pad(y, ((0, 0), (0, h_pad - h_out), (0, w_pad - w_out)))
        outs.append(y)
    return jnp.stack(outs, axis=0)


# ----------------------------------------------------------------------------
# Demo
# ----------------------------------------------------------------------------
if __name__ == "__main__":
    key = jax.random.PRNGKey(0)
    k1, k2, k3, k4 = jax.random.split(key, 4)

    # Two images with different spatial sizes (one portrait, one landscape) so that
    # BOTH contraction orders (height-first and width-first) are exercised.
    img0 = jax.random.uniform(k1, (4, 20, 16), dtype=jnp.float32)   # portrait
    img1 = jax.random.uniform(k2, (4, 8, 16), dtype=jnp.float32)    # landscape

    boxes0 = jnp.abs(jax.random.uniform(k3, (3, 4), dtype=jnp.float32)) * 10.0
    boxes1 = jnp.abs(jax.random.uniform(k4, (2, 4), dtype=jnp.float32)) * 6.0
    targets = [{"boxes": boxes0}, {"boxes": boxes1}]

    transform = GeneralizedRCNNTransformPallas(
        min_size=8,
        max_size=24,
        image_mean=[0.485, 0.456, 0.406, 0.450],
        image_std=[0.229, 0.224, 0.225, 0.230],
    )

    image_list, out_targets = transform([img0, img1], targets)

    jax.block_until_ready(image_list.tensors)
    for t in out_targets:
        jax.block_until_ready(t["boxes"])

    assert image_list.tensors.shape == (2, 4, 32, 32)
    assert out_targets[0]["boxes"].shape == (3, 4)
    assert out_targets[1]["boxes"].shape == (2, 4)
    assert image_list.image_sizes == [(10, 8), (8, 16)]

    # tolerance check against the pure-jnp reference (bf16 MXU weights -> loose atol)
    infos = [(20, 16, 10, 8, 0.5), (8, 16, 8, 16, 1.0)]
    ref = _reference_batched([img0, img1], transform.image_mean, transform.image_std,
                             infos, 32, 32)
    max_err = float(jnp.max(jnp.abs(image_list.tensors - ref)))
    assert max_err < 5e-2, f"max abs error vs reference: {max_err}"

    print("KERNEL_OK")
</pallas_src>

<mosaic_0001>
module attributes {stable_mosaic.version = 11 : i64} {
  func.func @kernel(%arg0: i32, %arg1: i32, %arg2: memref<1x8x16xbf16, #tpu.memory_space<vmem>>, %arg3: memref<32x8xbf16, #tpu.memory_space<vmem>>, %arg4: memref<16x32xbf16, #tpu.memory_space<vmem>>, %arg5: memref<2x4x32x32xf32, #tpu.memory_space<any>>, %arg6: memref<1x1x32x32xf32, #tpu.memory_space<vmem>>) attributes {dimension_semantics = [#tpu.dimension_semantics<parallel>, #tpu.dimension_semantics<arbitrary>], iteration_bounds = array<i64: 4, 1>, scalar_prefetch = 0 : i64, scratch_operands = 0 : i64, tpu.core_type = #tpu.core_type<tc>, window_params = [{transform_indices = @transform_0, window_bounds = array<i64: 1, 8, 16>}, {pipeline_mode = #tpu.pipeline_mode<synchronous>, transform_indices = @transform_1, window_bounds = array<i64: 32, 8>}, {transform_indices = @transform_2, window_bounds = array<i64: 16, 32>}, {}, {transform_indices = @transform_4, window_bounds = array<i64: 1, 1, 32, 32>}]} {
    %c0 = arith.constant 0 : index
    %c0_0 = arith.constant 0 : index
    %c0_1 = arith.constant 0 : index
    %0 = vector.load %arg2[%c0, %c0_0, %c0_1] : memref<1x8x16xbf16, #tpu.memory_space<vmem>>, vector<1x8x16xbf16>
    %1 = vector.shape_cast %0 : vector<1x8x16xbf16> to vector<8x16xbf16>
    %c0_2 = arith.constant 0 : index
    %c0_3 = arith.constant 0 : index
    %2 = vector.load %arg4[%c0_2, %c0_3] : memref<16x32xbf16, #tpu.memory_space<vmem>>, vector<16x32xbf16>
    %cst = arith.constant dense<0.000000e+00> : vector<8x32xf32>
    %3 = tpu.matmul %1, %2, %cst {dimension_numbers = #tpu.dot_dimension_numbers<[1], [0], [0], [1], [0, 0, 1, 1], [], []>} : vector<8x16xbf16>, vector<16x32xbf16>, vector<8x32xf32> -> vector<8x32xf32>
    %c0_4 = arith.constant 0 : index
    %c0_5 = arith.constant 0 : index
    %4 = vector.load %arg3[%c0_4, %c0_5] : memref<32x8xbf16, #tpu.memory_space<vmem>>, vector<32x8xbf16>
    %5 = arith.truncf %3 : vector<8x32xf32> to vector<8x32xbf16>
    %cst_6 = arith.constant dense<0.000000e+00> : vector<32x32xf32>
    %6 = tpu.matmul %4, %5, %cst_6 {dimension_numbers = #tpu.dot_dimension_numbers<[1], [0], [0], [1], [0, 0, 1, 1], [], []>} : vector<32x8xbf16>, vector<8x32xbf16>, vector<32x32xf32> -> vector<32x32xf32>
    %7 = vector.shape_cast %6 : vector<32x32xf32> to vector<1x1x32x32xf32>
    %c0_7 = arith.constant 0 : index
    %c0_8 = arith.constant 0 : index
    %c0_9 = arith.constant 0 : index
    %c0_10 = arith.constant 0 : index
    %8 = vector.load %arg6[%c0_7, %c0_8, %c0_9, %c0_10] : memref<1x1x32x32xf32, #tpu.memory_space<vmem>>, vector<1x1x32x32xf32>
    tpu.vector_store %arg6[%c0_7, %c0_8, %c0_9, %c0_10], %7 {strides = array<i32>} : memref<1x1x32x32xf32, #tpu.memory_space<vmem>>, vector<1x1x32x32xf32>,
    return
  }
  func.func @transform_0(%arg0: i32, %arg1: i32) -> (i32, i32, i32) {
    %c0_i32 = arith.constant 0 : i32
    %c0_i32_0 = arith.constant 0 : i32
    %c0_i32_1 = arith.constant 0 : i32
    return %arg0, %c0_i32, %c0_i32_0 : i32, i32, i32
  }
  func.func @transform_1(%arg0: i32, %arg1: i32) -> (i32, i32) {
    %c0_i32 = arith.constant 0 : i32
    %c0_i32_0 = arith.constant 0 : i32
    %c0_i32_1 = arith.constant 0 : i32
    return %c0_i32, %c0_i32_0 : i32, i32
  }
  func.func @transform_2(%arg0: i32, %arg1: i32) -> (i32, i32) {
    %c0_i32 = arith.constant 0 : i32
    %c0_i32_0 = arith.constant 0 : i32
    return %c0_i32, %arg1 : i32, i32
  }
  func.func @transform_4(%arg0: i32, %arg1: i32) -> (i32, i32, i32, i32) {
    %c1_i32 = arith.constant 1 : i32
    %c0_i32 = arith.constant 0 : i32
    %c0_i32_0 = arith.constant 0 : i32
    return %c1_i32, %arg0, %c0_i32, %arg1 : i32, i32, i32, i32
  }
}

module attributes {stable_mosaic.version = 11 : i64} {
  func.func @body(%arg0: i32, %arg1: i32, %arg2: memref<1x20x16xbf16, #tpu.memory_space<vmem>>, %arg3: memref<32x20xbf16, #tpu.memory_space<vmem>>, %arg4: memref<16x32xbf16, #tpu.memory_space<vmem>>, %arg5: memref<1x1x32x32xf32, #tpu.memory_space<vmem>>) attributes {dimension_semantics = [#tpu.dimension_semantics<parallel>, #tpu.dimension_semantics<arbitrary>], iteration_bounds = array<i64: 4, 1>, scalar_prefetch = 0 : i64, scratch_operands = 0 : i64, tpu.core_type = #tpu.core_type<tc>, window_params = [{transform_indices = @transform_0, window_bounds = array<i64: 1, 20, 16>}, {transform_indices = @transform_1, window_bounds = array<i64: 32, 20>}, {pipeline_mode = #tpu.pipeline_mode<synchronous>, transform_indices = @transform_2, window_bounds = array<i64: 16, 32>}, {transform_indices = @transform_3, window_bounds = array<i64: 1, 1, 32, 32>}]} {
    %c0 = arith.constant 0 : index
    %c0_0 = arith.constant 0 : index
    %c0_1 = arith.constant 0 : index
    %0 = vector.load %arg2[%c0, %c0_0, %c0_1] : memref<1x20x16xbf16, #tpu.memory_space<vmem>>, vector<1x20x16xbf16>
    %1 = vector.shape_cast %0 : vector<1x20x16xbf16> to vector<20x16xbf16>
    %c0_2 = arith.constant 0 : index
    %c0_3 = arith.constant 0 : index
    %2 = vector.load %arg3[%c0_2, %c0_3] : memref<32x20xbf16, #tpu.memory_space<vmem>>, vector<32x20xbf16>
    %cst = arith.constant dense<0.000000e+00> : vector<32x16xf32>
    %3 = tpu.matmul %2, %1, %cst {dimension_numbers = #tpu.dot_dimension_numbers<[1], [0], [0], [1], [0, 0, 1, 1], [], []>} : vector<32x20xbf16>, vector<20x16xbf16>, vector<32x16xf32> -> vector<32x16xf32>
    %4 = arith.truncf %3 : vector<32x16xf32> to vector<32x16xbf16>
    %c0_4 = arith.constant 0 : index
    %c0_5 = arith.constant 0 : index
    %5 = vector.load %arg4[%c0_4, %c0_5] : memref<16x32xbf16, #tpu.memory_space<vmem>>, vector<16x32xbf16>
    %cst_6 = arith.constant dense<0.000000e+00> : vector<32x32xf32>
    %6 = tpu.matmul %4, %5, %cst_6 {dimension_numbers = #tpu.dot_dimension_numbers<[1], [0], [0], [1], [0, 0, 1, 1], [], []>} : vector<32x16xbf16>, vector<16x32xbf16>, vector<32x32xf32> -> vector<32x32xf32>
    %7 = vector.shape_cast %6 : vector<32x32xf32> to vector<1x1x32x32xf32>
    %c0_7 = arith.constant 0 : index
    %c0_8 = arith.constant 0 : index
    %c0_9 = arith.constant 0 : index
    %c0_10 = arith.constant 0 : index
    %8 = vector.load %arg5[%c0_7, %c0_8, %c0_9, %c0_10] : memref<1x1x32x32xf32, #tpu.memory_space<vmem>>, vector<1x1x32x32xf32>
    tpu.vector_store %arg5[%c0_7, %c0_8, %c0_9, %c0_10], %7 {strides = array<i32>} : memref<1x1x32x32xf32, #tpu.memory_space<vmem>>, vector<1x1x32x32xf32>,
    return
  }
  func.func @transform_0(%arg0: i32, %arg1: i32) -> (i32, i32, i32) {
    %c0_i32 = arith.constant 0 : i32
    %c0_i32_0 = arith.constant 0 : i32
    %c0_i32_1 = arith.constant 0 : i32
    return %arg0, %c0_i32, %c0_i32_0 : i32, i32, i32
  }
  func.func @transform_1(%arg0: i32, %arg1: i32) -> (i32, i32) {
    %c0_i32 = arith.constant 0 : i32
    %c0_i32_0 = arith.constant 0 : i32
    return %arg1, %c0_i32 : i32, i32
  }
  func.func @transform_2(%arg0: i32, %arg1: i32) -> (i32, i32) {
    %c0_i32 = arith.constant 0 : i32
    %c0_i32_0 = arith.constant 0 : i32
    %c0_i32_1 = arith.constant 0 : i32
    return %c0_i32, %c0_i32_0 : i32, i32
  }
  func.func @transform_3(%arg0: i32, %arg1: i32) -> (i32, i32, i32, i32) {
    %c0_i32 = arith.constant 0 : i32
    %c0_i32_0 = arith.constant 0 : i32
    %c0_i32_1 = arith.constant 0 : i32
    return %c0_i32, %arg0, %arg1, %c0_i32_0 : i32, i32, i32, i32
  }
}

</mosaic_0001>

<bundles_post_ra>
// kernel: _build_batched_canvas.3
= control target key start
LH: loop header
LB: loop body
LE: loop exit
PB: predicated region body
PF: predicated region fallthrough
CT: control target
= control target key end

     0   :  { %9 = vsyncpa [#allocation3], 0  ;;  %s770_s0 = inlined_call_operand.vmem [shape: bf16[4,8,16], index: 0, kind: input, shape index: {}]   ;;  %s771_s1 = inlined_call_operand.vmem [shape: bf16[32,8], index: 1, kind: input, shape index: {}]   ;;  %s772_s2 = inlined_call_operand.vmem [shape: bf16[16,32], index: 2, kind: input, shape index: {}]   ;;  %s773_s3 = inlined_call_operand.hbm [shape: f32[2,4,32,32], index: 3, kind: input, shape index: {}, may-alias: {3,4}]   ;;  %s774_s4 = inlined_call_operand.hbm [shape: f32[2,4,32,32], index: 4, kind: output, shape index: {}, may-alias: {3,4}]  }
   0x1   :  { %11 = vsyncpa [#allocation3 + $0x1], 0  ;;  %s647_s15 = smov 0   ;;  %s649_s16 = smov 0  }
   0x2   :  { %s651_s17 = smov 0   ;;  %s653_s18 = smov 0  }
   0x3   :  { %s655_s19 = smov 0   ;;  %s657_s20 = smov 0  }
   0x4 LB: > { %s436_s3 = sadd.s32 4294967295, %s615_s20   ;;  %s437_s21 = sadd.s32 4294967294, %s615_s20   ;;  %s615_s20 = sphi %s657_s20, %s17_s20   ;;  %s611_s19 = sphi %s655_s19, %s781_s19   ;;  %s607_s18 = sphi %s653_s18, %s780_s18   ;;  %s603_s17 = sphi %s651_s17, %s779_s17   ;;  %s599_s16 = sphi %s649_s16, %s778_s16   ;;  %s595_s15 = sphi %s647_s15, %s777_s15  }
   0x5   : > { %s29_s22 = sadd.s32 1, %s611_s19  ;;  %s111_s23 = sadd.s32 1, %s603_s17 }
   0x6   : > { %p31_p0 = scmp.ge.s32.totalorder %s29_s22, 4  ;;  %p121_p1 = scmp.ne.s32.totalorder %s603_s17, %s599_s16 }
   0x7   : > { %p122_p2 = scmp.eq.s32.totalorder %s436_s3, 3  ;;  %p127_p3 = scmp.ne.s32.totalorder %s599_s16, %s595_s15 }
   0x8   : > { %s783_s22 = smov (%p31_p0, %s29_s22), 0  ;;  %p128_p5 = scmp.eq.s32.totalorder %s437_s21, 3 }
   0x9   : > { %p687_p4 = por %p122_p2, %p121_p1  ;;  %s106_s25 = ssub.s32 %s611_s19, %s783_s22 }
   0xa   : > { %p441_p6 = scmp.ge.s32.totalorder %s615_s20, 1  ;;  %p109_p7 = scmp.eq.s32.totalorder %s106_s25, 0 }
   0xb   : > { %p694_p8 = por %p128_p5, %p127_p3  ;;  %p163_p9 = scmp.lt.s32.totalorder %s615_s20, 5 }
   0xc   : > { %s700_s27 = scalar_select %p109_p7, %s603_s17, %s111_s23  }
   0xd   : > { %p164_p10 = pnand %p441_p6, %p163_p9 }
   0xe   : > { %v533_v0 = vld [vmem:[%s772_s2] sm:$0xff] (!%p164_p10)   ;;  %v617_v1 = vmov (!%p164_p10), 0.0   ;;  %p190_p11 = scmp.lt.s32.totalorder (!%p164_p10), %s607_s18, 3  ;;  %vm618_vm0 = vmmov (!%p164_p10), 0   ;;  %vm208_vm1 = vcmask (!%p164_p10), 130048   ;;  %vm267_vm2 = vcmask (!%p164_p10), 64512  }
   0xf   : > { %167 = sbr.rel (%p164_p10) target bundleno = 475 (0x1db), region = 32  ;;  %461 = vmatprep.subr.bf16.mxu0 (!%p164_p10), %v617_v1  ;;  %463 = vmatprep.mubr.msk.bf16.mxu0 (!%p164_p10), %vm618_vm0, %v617_v1  ;;  %v534_v3 = vld [vmem:[%s771_s1] sm:$0xff] (!%p164_p10)   ;;  %vm274_vm3 = vcmask (!%p164_p10), 1043456   ;;  %v535_v10 = vld [vmem:[%s771_s1 + $0x8] sm:$0xff] (!%p164_p10)   ;;  %s187_s13 = sand.u32 (!%p164_p10), 1, %s599_s16   ;;  %vm327_vm4 = vcmask (!%p164_p10), 261120  }
  0x10   : > { %462 = vmatpush3.bf16.msra.mxu0 (!%p164_p10), %v533_v0  ;;  %469 = vmatprep.mubr.msk.bf16.mxu1 (!%p164_p10), %vm267_vm2, %v534_v3  ;;  %s442_s14 = sshll.u32 (!%p164_p10), %s187_s13, 5  ;;  %s455_s3 = sshll.u32 (!%p164_p10), %s607_s18, 9 }
  0x11   : > { %s189_s21 = scalar_lea.vmem (!%p164_p10), [#allocation2], %s442_s14  ;;  %s393_s29 = scalar_lea.hbm (!%p164_p10), %s774_s4, %s455_s3 }
  0x12   : > { %s348_s23 = sshll.u32 (!%p164_p10), %s189_s21, 4  ;;  %s619_s6 = smov (!%p164_p10), [#allocation2]   ;;  %s721_s23 = int_to_ptr.vmem [resolvable:$true] %s348_s23 }
  0x13   : > { %s540_s7 = sshll.u32 (!%p164_p10), %s619_s6, 4  ;;  %s541_s7 = int_to_ptr.vmem [resolvable:$false] %s540_s7 }
  0x14   : > { %p543_p1 = scmp.lt.s32.totalorder (!%p164_p10), %s721_s23, %s541_s7 }
  0x16   : > { %s191_s30 = scalar_select %p190_p11, %s607_s18, 3 }
  0x17   : > { %s725_s18 = scalar_lea.sflag [#allocation3], %s187_s13 }
  0x18   : > { %s443_s5 = sshll.u32 %s191_s30, 2  ;;  %s723_s30 = scalar_lea.hbm %s393_s29, 2048 }
  0x19   : > { %s193_s8 = scalar_lea.vmem %s770_s0, %s443_s5  ;;  %s536_s5 = scalar_lea.vmem %s721_s23, 512 }
  0x1a   : > { %v199_v2 = vld [vmem:[%s193_s8] sm:$0xf]  ;;  %p537_p12 = scmp.ne.s32.totalorder %s721_s23, %s536_s5  ;;  %s542_s8 = scalar_lea.vmem %s541_s7, 1024 }
  0x1b   : > { %464 = vmatmul.mubr.msk.bf16.vlgmr.msra.gmra.mrb[0].mxu0 %vm208_vm1, %v199_v2  ;;  %p544_p2 = scmp.lt.s32.totalorder %s542_s8, %s536_s5 }
  0x1c   : > { %p538_p13 = pnand %p537_p12, %p687_p4 }
  0x1d   : > { %p545_p3 = por %p544_p2, %p543_p1 }
  0x1e   : > { %p539_p0 = pneg %p538_p13 }
  0x20   : > { %p546_p5 = pnand %p545_p3, %p539_p0 }
  0xee   : > { %v246_v4 = vpop.f32.mrb[0].mxu0 }
  0xef   : > { %v256_v5 = vpack.c.bf16 %v246_v4, %v246_v4  ;;  %v465_v6 = vpop.f32.mrb[1].mxu0 }
  0xf0   : > { %v249_v7 = vpop.f32.mrb[2].mxu0 }
  0xf1   : > { %v466_v8 = vpop.f32.mrb[3].mxu0  ;;  %473 = vmatprep.subr.msk.bf16.mxu1 %vm274_vm3, %v256_v5  ;;  %v276_v9 = vsel %vm274_vm3, %v256_v5, 0 }
  0xf2   : > { %468 = vmatpush3.bf16.msra.mxu1 %v276_v9 }
  0xf5   : > { %470 = vmatmul.mubr.msk.bf16.vlgmr.msra.gmra.mrb[0].mxu1 %vm267_vm2, %v535_v10 }
 0x1c8   : > { %v471_v11 = vpop.f32.mrb[0].mxu1 }
 0x1c9   : > { %330 = vst.msk [vmem:[%s189_s21 + $0x10] sm:$0xff] %vm327_vm4, %v471_v11  ;;  %v312_v12 = vpop.f32.mrb[1].mxu1 }
 0x1ca   : > { %328 = vst.msk [vmem:[%s189_s21] sm:$0xff] %vm327_vm4, %v312_v12  ;;  %v472_v13 = vpop.f32.mrb[2].mxu1 }
 0x1cb   : > { %331 = vst.msk [vmem:[%s189_s21 + $0x18] sm:$0xff] %vm327_vm4, %v472_v13  ;;  %v315_v14 = vpop.f32.mrb[3].mxu1 }
 0x1cc   : > { %329 = vst.msk [vmem:[%s189_s21 + $0x8] sm:$0xff] %vm327_vm4, %v315_v14 }
 0x1cd   : > { %549 = shalt.err (!%p546_p5)
}
 0x1ce   : > { %s564_s9 = scalar_lea.hbm %s393_s29, 2560  ;;  %s554_s12 = scalar_lea.hbm %s774_s4, 4096 }
 0x1cf   : > { %p551_p6 = scmp.ne.s32.totalorder %s723_s30, %s564_s9  ;;  %p555_p10 = scmp.lt.u32.totalorder %s723_s30, %s774_s4 }
 0x1d0   : > { %p556_p11 = scmp.lt.u32.totalorder %s554_s12, %s564_s9  ;;  %p558_p13 = scmp.lt.u32.totalorder %s564_s9, %s723_s30 }
 0x1d1   : > { %p552_p7 = pnand %p551_p6, %p687_p4 }
 0x1d2   : > { %p557_p12 = por %p556_p11, %p555_p10 }
 0x1d3   : > { %p553_p9 = pneg %p552_p7 }
 0x1d4   : > { %p559_p0 = por %p558_p13, %p557_p12 }
 0x1d6   : > { %p560_p1 = pnand %p559_p0, %p553_p9 }
 0x1d8   : > { %563 = shalt.err (!%p560_p1)
}
 0x1d9   : > { %s620_s3 = smov 128   ;;  %s621_s21 = smov 8  }
 0x1da   : > { %474 = dma.vmem_to_hbm [thread:$0]  (%p687_p4), %s721_s23, 512, %s723_s30, %s725_s18, %s620_s3, %s620_s3, %s621_s21  }
 0x1db PF: > { %p480_p2 = scmp.ge.s32.totalorder %s615_s20, 2  ;;  %s363_s25 = sand.u32 1, %s595_s15  }
 0x1dc   : > { %s364_s28 = scalar_lea.sflag [#allocation3], %s363_s25 }
 0x1dd   : > { %p477_p3 = pnand %p480_p2, %p694_p8 }
 0x1df   : > { %590 = dma.done.wait (!%p477_p3), %s364_s28, 512  }
 0x1e0   : > { %592 = vsyncadd (!%p477_p3), %s364_s28, 4294966784  ;;  %s17_s20 = sadd.s32 1, %s615_s20   ;;  %s777_s15 = smov %s599_s16 }
 0x1e1   : > { %p14_p5 = scmp.ge.s32.totalorder %s17_s20, 6   ;;  %s778_s16 = smov %s603_s17 }
 0x1e2   : > { %s779_s17 = smov %s700_s27  ;;  %s780_s18 = smov %s611_s19 }
 0x1e3   : > { %s781_s19 = smov %s783_s22  ;;  %16 = sbr.rel (!%p14_p5) target bundleno = 4 (0x4), region = 70 }
 0x1ea   :  { %369 = vsyncpa [#allocation3], 1 }
 0x1eb   :  { %371 = vsyncpa [#allocation3 + $0x1], 1 }

// kernel: _build_batched_canvas.2
= control target key start
LH: loop header
LB: loop body
LE: loop exit
PB: predicated region body
PF: predicated region fallthrough
CT: control target
= control target key end

     0   :  { %8 = vsyncpa [#allocation3], 0  ;;  %s803_s0 = inlined_call_operand.vmem [shape: bf16[4,20,16], index: 0, kind: input, shape index: {}]   ;;  %s804_s1 = inlined_call_operand.vmem [shape: bf16[32,20], index: 1, kind: input, shape index: {}]   ;;  %s805_s2 = inlined_call_operand.vmem [shape: bf16[16,32], index: 2, kind: input, shape index: {}]   ;;  %s806_s3 = inlined_call_operand.hbm [shape: f32[2,4,32,32], index: 3, kind: output, shape index: {}]  }
   0x1   :  { %10 = vsyncpa [#allocation3 + $0x1], 0  ;;  %s679_s12 = smov 0   ;;  %s681_s13 = smov 0  }
   0x2   :  { %s683_s14 = smov 0   ;;  %s685_s15 = smov 0  }
   0x3   :  { %s687_s16 = smov 0   ;;  %s689_s17 = smov 0  }
   0x4 LB: > { %s468_s18 = sadd.s32 4294967295, %s654_s17   ;;  %s469_s19 = sadd.s32 4294967294, %s654_s17   ;;  %s654_s17 = sphi %s689_s17, %s16_s17   ;;  %s650_s16 = sphi %s687_s16, %s813_s16   ;;  %s646_s15 = sphi %s685_s15, %s812_s15   ;;  %s642_s14 = sphi %s683_s14, %s811_s14   ;;  %s638_s13 = sphi %s681_s13, %s810_s13   ;;  %s634_s12 = sphi %s679_s12, %s809_s12  }
   0x5   : > { %s28_s20 = sadd.s32 1, %s650_s16  ;;  %s110_s21 = sadd.s32 1, %s642_s14 }
   0x6   : > { %p30_p0 = scmp.ge.s32.totalorder %s28_s20, 4  ;;  %p120_p1 = scmp.ne.s32.totalorder %s642_s14, %s638_s13 }
   0x7   : > { %p121_p2 = scmp.eq.s32.totalorder %s468_s18, 3  ;;  %p126_p3 = scmp.ne.s32.totalorder %s638_s13, %s634_s12 }
   0x8   : > { %s815_s20 = smov (%p30_p0, %s28_s20), 0  ;;  %p127_p5 = scmp.eq.s32.totalorder %s469_s19, 3 }
   0x9   : > { %p719_p4 = por %p121_p2, %p120_p1  ;;  %s105_s23 = ssub.s32 %s650_s16, %s815_s20 }
   0xa   : > { %p473_p6 = scmp.ge.s32.totalorder %s654_s17, 1  ;;  %p108_p7 = scmp.eq.s32.totalorder %s105_s23, 0 }
   0xb   : > { %p726_p8 = por %p127_p5, %p126_p3  ;;  %p165_p9 = scmp.lt.s32.totalorder %s654_s17, 5 }
   0xc   : > { %s732_s25 = scalar_select %p108_p7, %s642_s14, %s110_s21  }
   0xd   : > { %p166_p10 = pnand %p473_p6, %p165_p9 }
   0xe   : > { %p194_p11 = scmp.lt.s32.totalorder (!%p166_p10), %s646_s15, 3  ;;  %v573_v0 = vld [vmem:[%s804_s1] sm:$0xff] (!%p166_p10)   ;;  %vm233_vm0 = vcmask (!%p166_p10), 162816   ;;  %vm240_vm1 = vcmask (!%p166_p10), 1041408   ;;  %v574_v4 = vld [vmem:[%s804_s1 + $0x8] sm:$0xff] (!%p166_p10)   ;;  %vm303_vm2 = vcmask (!%p166_p10), 130048  }
   0xf   : > { %169 = sbr.rel (%p166_p10) target bundleno = 484 (0x1e4), region = 32  ;;  %502 = vmatprep.mubr.msk.bf16.mxu0 (!%p166_p10), %vm233_vm0, %v573_v0  ;;  %v575_v5 = vld [vmem:[%s805_s2] sm:$0xff] (!%p166_p10)   ;;  %s191_s10 = sand.u32 (!%p166_p10), 1, %s638_s13   ;;  %vm359_vm3 = vcmask (!%p166_p10), 261120  }
  0x10   : > { %506 = vmatprep.subr.bf16.mxu1 (!%p166_p10), %v575_v5  ;;  %s474_s11 = sshll.u32 (!%p166_p10), %s191_s10, 5  ;;  %s490_s21 = sshll.u32 (!%p166_p10), %s646_s15, 9 }
  0x11   : > { %507 = vmatpush3.bf16.msra.mxu1 (!%p166_p10), %v575_v5  ;;  %s193_s18 = scalar_lea.vmem (!%p166_p10), [#allocation2], %s474_s11  ;;  %s755_s27 = scalar_lea.hbm (!%p166_p10), %s806_s3, %s490_s21 }
  0x12   : > { %s380_s19 = sshll.u32 (!%p166_p10), %s193_s18, 4  ;;  %s750_s19 = int_to_ptr.vmem [resolvable:$true] %s380_s19 }
  0x16   : > { %s195_s28 = scalar_select %p194_p11, %s646_s15, 3 }
  0x17   : > { %s576_s15 = scalar_lea.vmem %s750_s19, 512 }
  0x18   : > { %s513_s29 = smul.u32 12, %s195_s28  ;;  %s757_s28 = scalar_lea.sflag [#allocation3], %s191_s10 }
  0x19   : > { %p577_p12 = scmp.ne.s32.totalorder %s750_s19, %s576_s15 }
  0x1a   : > { %s198_s5 = scalar_lea.vmem %s803_s0, %s513_s29  ;;  %s656_s29 = smov [#allocation2]  }
  0x1b   : > { %v571_v1 = vld [vmem:[%s198_s5] sm:$0xff]   ;;  %v572_v2 = vld [vmem:[%s198_s5 + $0x8] ss:$0 sps:$4 sm:$0x33]   ;;  %p578_p13 = pnand %p577_p12, %p719_p4  ;;  %s580_s30 = sshll.u32 %s656_s29, 4  ;;  %s581_s30 = int_to_ptr.vmem [resolvable:$false] %s580_s30 }
  0x1c   : > { %498 = vmatprep.subr.bf16.mxu0 %v571_v1  ;;  %v242_v3 = vsel %vm240_vm1, %v572_v2, 0  ;;  %s582_s4 = scalar_lea.vmem %s581_s30, 1024  ;;  %p583_p1 = scmp.lt.s32.totalorder %s750_s19, %s581_s30 }
  0x1d   : > { %499 = vmatpush3.bf16.msra.mxu0 %v571_v1  ;;  %p579_p0 = pneg %p578_p13  ;;  %p584_p2 = scmp.lt.s32.totalorder %s582_s4, %s576_s15 }
  0x1e   : > { %512 = vmatprep.subr.msk.bf16.mxu0 %vm240_vm1, %v572_v2 }
  0x1f   : > { %p585_p3 = por %p584_p2, %p583_p1 }
  0x21   : > { %501 = vmatpush3.bf16.msra.mxu0 %v242_v3  ;;  %p586_p5 = pnand %p585_p3, %p579_p0 }
  0x24   : > { %503 = vmatmul.mubr.msk.bf16.vlgmr.msra.gmra.mrb[0].mxu0 %vm233_vm0, %v574_v4 }
  0xf7   : > { %v504_v6 = vpop.f32.mrb[0].mxu0 }
  0xf8   : > { %v278_v7 = vpop.f32.mrb[1].mxu0 }
  0xf9   : > { %v505_v8 = vpop.f32.mrb[2].mxu0 }
  0xfa   : > { %v294_v9 = vpack.c.bf16 %v505_v8, %v504_v6  ;;  %v281_v10 = vpop.f32.mrb[3].mxu0 }
  0xfb   : > { %v293_v11 = vpack.c.bf16 %v281_v10, %v278_v7 }
  0xfd   : > { %508 = vmatprep.mubr.msk.bf16.mxu1 %vm303_vm2, %v293_v11 }
  0xfe   : > { %509 = vmatmul.mubr.msk.bf16.vlgmr.msra.gmra.mrb[0].mxu1 %vm303_vm2, %v294_v9 }
 0x1d1   : > { %v510_v12 = vpop.f32.mrb[0].mxu1 }
 0x1d2   : > { %362 = vst.msk [vmem:[%s193_s18 + $0x10] sm:$0xff] %vm359_vm3, %v510_v12  ;;  %v344_v13 = vpop.f32.mrb[1].mxu1 }
 0x1d3   : > { %360 = vst.msk [vmem:[%s193_s18] sm:$0xff] %vm359_vm3, %v344_v13  ;;  %v511_v14 = vpop.f32.mrb[2].mxu1 }
 0x1d4   : > { %363 = vst.msk [vmem:[%s193_s18 + $0x18] sm:$0xff] %vm359_vm3, %v511_v14  ;;  %v347_v15 = vpop.f32.mrb[3].mxu1 }
 0x1d5   : > { %361 = vst.msk [vmem:[%s193_s18 + $0x8] sm:$0xff] %vm359_vm3, %v347_v15 }
 0x1d6   : > { %589 = shalt.err (!%p586_p5)
}
 0x1d7   : > { %s590_s5 = scalar_lea.hbm %s755_s27, 512  ;;  %s594_s8 = scalar_lea.hbm %s806_s3, 4096 }
 0x1d8   : > { %p591_p6 = scmp.ne.s32.totalorder %s755_s27, %s590_s5  ;;  %p595_p10 = scmp.lt.u32.totalorder %s755_s27, %s806_s3 }
 0x1d9   : > { %p596_p11 = scmp.lt.u32.totalorder %s594_s8, %s590_s5  ;;  %p598_p13 = scmp.lt.u32.totalorder %s590_s5, %s755_s27 }
 0x1da   : > { %p592_p7 = pnand %p591_p6, %p719_p4 }
 0x1db   : > { %p597_p12 = por %p596_p11, %p595_p10 }
 0x1dc   : > { %p593_p9 = pneg %p592_p7 }
 0x1dd   : > { %p599_p0 = por %p598_p13, %p597_p12 }
 0x1df   : > { %p600_p1 = pnand %p599_p0, %p593_p9 }
 0x1e1   : > { %603 = shalt.err (!%p600_p1)
}
 0x1e2   : > { %s657_s11 = smov 128   ;;  %s658_s18 = smov 8  }
 0x1e3   : > { %514 = dma.vmem_to_hbm [thread:$0]  (%p719_p4), %s750_s19, 512, %s755_s27, %s757_s28, %s657_s11, %s657_s11, %s658_s18  }
 0x1e4 PF: > { %p520_p2 = scmp.ge.s32.totalorder %s654_s17, 2  ;;  %s395_s21 = sand.u32 1, %s634_s12  }
 0x1e5   : > { %s396_s23 = scalar_lea.sflag [#allocation3], %s395_s21 }
 0x1e6   : > { %p517_p3 = pnand %p520_p2, %p726_p8 }
 0x1e8   : > { %629 = dma.done.wait (!%p517_p3), %s396_s23, 512  }
 0x1e9   : > { %631 = vsyncadd (!%p517_p3), %s396_s23, 4294966784  ;;  %s16_s17 = sadd.s32 1, %s654_s17   ;;  %s809_s12 = smov %s638_s13 }
 0x1ea   : > { %p13_p5 = scmp.ge.s32.totalorder %s16_s17, 6   ;;  %s810_s13 = smov %s642_s14 }
 0x1eb   : > { %s811_s14 = smov %s732_s25  ;;  %s812_s15 = smov %s650_s16 }
 0x1ec   : > { %s813_s16 = smov %s815_s20  ;;  %15 = sbr.rel (!%p13_p5) target bundleno = 4 (0x4), region = 70 }
 0x1f3   :  { %401 = vsyncpa [#allocation3], 1 }
 0x1f4   :  { %403 = vsyncpa [#allocation3 + $0x1], 1 }

</bundles_post_ra>
